<compile_context>
chip_gen: v7x
topology: tpu7x:2x2x1
jax: 0.10.0
libtpu: 0.0.40
codegen_flags: <defaults>
</compile_context>

<pallas_src>
import jax
import jax.numpy as jnp
from jax.experimental import pallas as pl
from jax.experimental.pallas import tpu as pltpu


def _round_up(a, m):
    return -(-a // m) * m


def _choose_block_b(B, C, H, itemsize, budget_bytes=8 << 20):
    """Largest batch tile (divisor of B) whose double-buffered in+out VMEM
    footprint fits a conservative budget, keeping >= 2 grid steps when B >= 2
    so both TensorCores are used on v7x."""
    in_bytes = 8 * _round_up(C, 8) * _round_up(H, 128) * itemsize
    out_bytes = _round_up(4 * C, 8) * _round_up(2 * H, 128) * itemsize
    per_elem = 2 * (in_bytes + out_bytes)            # x2: pipeline double buffering
    cap = max(1, budget_bytes // max(per_elem, 1))
    if B >= 2:
        cap = min(cap, max(1, B // 2))               # keep >= 2 grid steps (megacore)
    block_b = 1
    for d in range(1, B + 1):
        if B % d == 0 and d <= cap:
            block_b = d
    return block_b


def reshape_input_kernel(xt_ref, o_ref):
    # xt_ref block: (Bt, 8, C, H)   (H is the lane dim -> lane-dense loads)
    # o_ref  block: (Bt, 4C, 2H)
    C = xt_ref.shape[2]
    H = xt_ref.shape[3]
    # Eight direct sub-block copies; no concatenates / cross-lane extracts.
    for j in range(2):          # output column half (0: cols 0..3, 1: cols 4..7)
        for i in range(4):      # output channel group
            o_ref[:, i * C:(i + 1) * C, j * H:(j + 1) * H] = xt_ref[:, 4 * j + i, :, :]


def reshape_input(x, *, block_b=None):
    B, C, H, W = x.shape
    assert W >= 8, "forward slices last-dim indices 0..7, so W must be >= 8"
    out_c, out_h = 4 * C, 2 * H

    # Layout plumbing in the wrapper (cheap, makes the kernel lane-dense):
    #   drop unused columns, move W(=8) off the minor dim -> (B, 8, C, H).
    xt = jnp.transpose(x[..., :8], (0, 3, 1, 2))

    if block_b is None:
        block_b = _choose_block_b(B, C, H, jnp.dtype(x.dtype).itemsize)
    grid_b = B // block_b

    out2d = pl.pallas_call(
        reshape_input_kernel,
        out_shape=jax.ShapeDtypeStruct((B, out_c, out_h), x.dtype),
        grid=(grid_b,),
        in_specs=[pl.BlockSpec((block_b, 8, C, H), lambda b: (b, 0, 0, 0))],
        out_specs=pl.BlockSpec((block_b, out_c, out_h), lambda b: (b, 0, 0)),
        compiler_params=pltpu.CompilerParams(
            dimension_semantics=("parallel",),
        ),
    )(xt)

    # Free reshape to the module's (B, 1, 4C, 2H) output layout.
    return out2d[:, None, :, :]


def reshape_input_reference(x):
    # Direct transcription of the PyTorch forward for verification.
    channels = [x[:, :, :, i:i + 1] for i in range(8)]
    x1 = jnp.concatenate(channels[:4], axis=1)
    x2 = jnp.concatenate(channels[4:8], axis=1)
    x3 = jnp.concatenate([x1, x2], axis=2)
    return jnp.transpose(x3, (0, 3, 1, 2))


if __name__ == "__main__":
    key = jax.random.PRNGKey(0)
    # Small NCHW input; W > 8 exercises the wrapper column slice as well.
    B, C, H, W = 2, 4, 16, 16
    x = jax.random.normal(key, (B, C, H, W), dtype=jnp.float32)

    out = reshape_input(x)
    out = jax.block_until_ready(out)

    ref = reshape_input_reference(x)
    assert out.shape == (B, 1, 4 * C, 2 * H), out.shape
    assert out.dtype == x.dtype
    assert jnp.allclose(out, ref), "Pallas output mismatch vs reference"

    # Also check the W == 8 case used by the original test.
    x8 = x[..., :8]
    out8 = jax.block_until_ready(reshape_input(x8))
    assert jnp.allclose(out8, reshape_input_reference(x8)), "W==8 mismatch"

    print("KERNEL_OK")
</pallas_src>

<mosaic_0001>
module attributes {stable_mosaic.version = 11 : i64} {
  func.func @reshape_input_kernel(%arg0: i32, %arg1: memref<1x8x4x16xf32, #tpu.memory_space<vmem>>, %arg2: memref<1x16x32xf32, #tpu.memory_space<vmem>>) attributes {dimension_semantics = [#tpu.dimension_semantics<parallel>], iteration_bounds = array<i64: 2>, scalar_prefetch = 0 : i64, scratch_operands = 0 : i64, tpu.core_type = #tpu.core_type<tc>, window_params = [{transform_indices = @transform_0, window_bounds = array<i64: 1, 8, 4, 16>}, {transform_indices = @transform_1, window_bounds = array<i64: 1, 16, 32>}]} {
    %c0 = arith.constant 0 : index
    %c0_0 = arith.constant 0 : index
    %c0_1 = arith.constant 0 : index
    %c0_2 = arith.constant 0 : index
    %0 = vector.load %arg1[%c0, %c0_0, %c0_1, %c0_2] : memref<1x8x4x16xf32, #tpu.memory_space<vmem>>, vector<1x1x4x16xf32>
    %1 = vector.shape_cast %0 : vector<1x1x4x16xf32> to vector<1x4x16xf32>
    %c0_3 = arith.constant 0 : index
    %c0_4 = arith.constant 0 : index
    %c0_5 = arith.constant 0 : index
    %2 = vector.load %arg2[%c0_3, %c0_4, %c0_5] : memref<1x16x32xf32, #tpu.memory_space<vmem>>, vector<1x4x16xf32>
    tpu.vector_store %arg2[%c0_3, %c0_4, %c0_5], %1 {strides = array<i32>} : memref<1x16x32xf32, #tpu.memory_space<vmem>>, vector<1x4x16xf32>,
    %c0_6 = arith.constant 0 : index
    %c1 = arith.constant 1 : index
    %c0_7 = arith.constant 0 : index
    %c0_8 = arith.constant 0 : index
    %3 = vector.load %arg1[%c0_6, %c1, %c0_7, %c0_8] : memref<1x8x4x16xf32, #tpu.memory_space<vmem>>, vector<1x1x4x16xf32>
    %4 = vector.shape_cast %3 : vector<1x1x4x16xf32> to vector<1x4x16xf32>
    %c0_9 = arith.constant 0 : index
    %c4 = arith.constant 4 : index
    %c0_10 = arith.constant 0 : index
    %5 = vector.load %arg2[%c0_9, %c4, %c0_10] : memref<1x16x32xf32, #tpu.memory_space<vmem>>, vector<1x4x16xf32>
    tpu.vector_store %arg2[%c0_9, %c4, %c0_10], %4 {strides = array<i32>} : memref<1x16x32xf32, #tpu.memory_space<vmem>>, vector<1x4x16xf32>,
    %c0_11 = arith.constant 0 : index
    %c2 = arith.constant 2 : index
    %c0_12 = arith.constant 0 : index
    %c0_13 = arith.constant 0 : index
    %6 = vector.load %arg1[%c0_11, %c2, %c0_12, %c0_13] : memref<1x8x4x16xf32, #tpu.memory_space<vmem>>, vector<1x1x4x16xf32>
    %7 = vector.shape_cast %6 : vector<1x1x4x16xf32> to vector<1x4x16xf32>
    %c0_14 = arith.constant 0 : index
    %c8 = arith.constant 8 : index
    %c0_15 = arith.constant 0 : index
    %8 = vector.load %arg2[%c0_14, %c8, %c0_15] : memref<1x16x32xf32, #tpu.memory_space<vmem>>, vector<1x4x16xf32>
    tpu.vector_store %arg2[%c0_14, %c8, %c0_15], %7 {strides = array<i32>} : memref<1x16x32xf32, #tpu.memory_space<vmem>>, vector<1x4x16xf32>,
    %c0_16 = arith.constant 0 : index
    %c3 = arith.constant 3 : index
    %c0_17 = arith.constant 0 : index
    %c0_18 = arith.constant 0 : index
    %9 = vector.load %arg1[%c0_16, %c3, %c0_17, %c0_18] : memref<1x8x4x16xf32, #tpu.memory_space<vmem>>, vector<1x1x4x16xf32>
    %10 = vector.shape_cast %9 : vector<1x1x4x16xf32> to vector<1x4x16xf32>
    %c0_19 = arith.constant 0 : index
    %c12 = arith.constant 12 : index
    %c0_20 = arith.constant 0 : index
    %11 = vector.load %arg2[%c0_19, %c12, %c0_20] : memref<1x16x32xf32, #tpu.memory_space<vmem>>, vector<1x4x16xf32>
    tpu.vector_store %arg2[%c0_19, %c12, %c0_20], %10 {strides = array<i32>} : memref<1x16x32xf32, #tpu.memory_space<vmem>>, vector<1x4x16xf32>,
    %c0_21 = arith.constant 0 : index
    %c4_22 = arith.constant 4 : index
    %c0_23 = arith.constant 0 : index
    %c0_24 = arith.constant 0 : index
    %12 = vector.load %arg1[%c0_21, %c4_22, %c0_23, %c0_24] : memref<1x8x4x16xf32, #tpu.memory_space<vmem>>, vector<1x1x4x16xf32>
    %13 = vector.shape_cast %12 : vector<1x1x4x16xf32> to vector<1x4x16xf32>
    %c0_25 = arith.constant 0 : index
    %c0_26 = arith.constant 0 : index
    %c16 = arith.constant 16 : index
    %14 = vector.load %arg2[%c0_25, %c0_26, %c16] : memref<1x16x32xf32, #tpu.memory_space<vmem>>, vector<1x4x16xf32>
    tpu.vector_store %arg2[%c0_25, %c0_26, %c16], %13 {strides = array<i32>} : memref<1x16x32xf32, #tpu.memory_space<vmem>>, vector<1x4x16xf32>,
    %c0_27 = arith.constant 0 : index
    %c5 = arith.constant 5 : index
    %c0_28 = arith.constant 0 : index
    %c0_29 = arith.constant 0 : index
    %15 = vector.load %arg1[%c0_27, %c5, %c0_28, %c0_29] : memref<1x8x4x16xf32, #tpu.memory_space<vmem>>, vector<1x1x4x16xf32>
    %16 = vector.shape_cast %15 : vector<1x1x4x16xf32> to vector<1x4x16xf32>
    %c0_30 = arith.constant 0 : index
    %c4_31 = arith.constant 4 : index
    %c16_32 = arith.constant 16 : index
    %17 = vector.load %arg2[%c0_30, %c4_31, %c16_32] : memref<1x16x32xf32, #tpu.memory_space<vmem>>, vector<1x4x16xf32>
    tpu.vector_store %arg2[%c0_30, %c4_31, %c16_32], %16 {strides = array<i32>} : memref<1x16x32xf32, #tpu.memory_space<vmem>>, vector<1x4x16xf32>,
    %c0_33 = arith.constant 0 : index
    %c6 = arith.constant 6 : index
    %c0_34 = arith.constant 0 : index
    %c0_35 = arith.constant 0 : index
    %18 = vector.load %arg1[%c0_33, %c6, %c0_34, %c0_35] : memref<1x8x4x16xf32, #tpu.memory_space<vmem>>, vector<1x1x4x16xf32>
    %19 = vector.shape_cast %18 : vector<1x1x4x16xf32> to vector<1x4x16xf32>
    %c0_36 = arith.constant 0 : index
    %c8_37 = arith.constant 8 : index
    %c16_38 = arith.constant 16 : index
    %20 = vector.load %arg2[%c0_36, %c8_37, %c16_38] : memref<1x16x32xf32, #tpu.memory_space<vmem>>, vector<1x4x16xf32>
    tpu.vector_store %arg2[%c0_36, %c8_37, %c16_38], %19 {strides = array<i32>} : memref<1x16x32xf32, #tpu.memory_space<vmem>>, vector<1x4x16xf32>,
    %c0_39 = arith.constant 0 : index
    %c7 = arith.constant 7 : index
    %c0_40 = arith.constant 0 : index
    %c0_41 = arith.constant 0 : index
    %21 = vector.load %arg1[%c0_39, %c7, %c0_40, %c0_41] : memref<1x8x4x16xf32, #tpu.memory_space<vmem>>, vector<1x1x4x16xf32>
    %22 = vector.shape_cast %21 : vector<1x1x4x16xf32> to vector<1x4x16xf32>
    %c0_42 = arith.constant 0 : index
    %c12_43 = arith.constant 12 : index
    %c16_44 = arith.constant 16 : index
    %23 = vector.load %arg2[%c0_42, %c12_43, %c16_44] : memref<1x16x32xf32, #tpu.memory_space<vmem>>, vector<1x4x16xf32>
    tpu.vector_store %arg2[%c0_42, %c12_43, %c16_44], %22 {strides = array<i32>} : memref<1x16x32xf32, #tpu.memory_space<vmem>>, vector<1x4x16xf32>,
    return
  }
  func.func @transform_0(%arg0: i32) -> (i32, i32, i32, i32) {
    %c0_i32 = arith.constant 0 : i32
    %c0_i32_0 = arith.constant 0 : i32
    %c0_i32_1 = arith.constant 0 : i32
    %c0_i32_2 = arith.constant 0 : i32
    return %arg0, %c0_i32, %c0_i32_0, %c0_i32_1 : i32, i32, i32, i32
  }
  func.func @transform_1(%arg0: i32) -> (i32, i32, i32) {
    %c0_i32 = arith.constant 0 : i32
    %c0_i32_0 = arith.constant 0 : i32
    %c0_i32_1 = arith.constant 0 : i32
    return %arg0, %c0_i32, %c0_i32_0 : i32, i32, i32
  }
}

</mosaic_0001>

<bundles_post_ra>
// kernel: tpu_custom_call.1
= control target key start
LH: loop header
LB: loop body
LE: loop exit
PB: predicated region body
PF: predicated region fallthrough
CT: control target
= control target key end

     0   :  { %6 = vsyncpa [#allocation3], 0  ;;  %s619_s0 = inlined_call_operand.hbm [shape: f32[2,8,4,16], index: 0, kind: input, shape index: {}]   ;;  %s620_s1 = inlined_call_operand.hbm [shape: f32[2,16,32], index: 1, kind: output, shape index: {}]  }
   0x1   :  { %8 = vsyncpa [#allocation3 + $0x1], 0 }
   0x2   :  { %9 = vsyncpa [#allocation4], 0 }
   0x3   :  { %11 = vsyncpa [#allocation4 + $0x1], 0  ;;  %s452_s6 = smov 0   ;;  %s454_s7 = smov 0  }
   0x4   :  { %s456_s8 = smov 0   ;;  %s458_s9 = smov 0  }
   0x5 LB: > { %s473_s10 = sadd.s32 4294967295, %s433_s9   ;;  %s263_s11 = sadd.s32 4294967294, %s433_s9   ;;  %s433_s9 = sphi %s458_s9, %s633_s9   ;;  %s429_s8 = sphi %s456_s8, %s632_s8   ;;  %s425_s7 = sphi %s454_s7, %s631_s7   ;;  %s421_s6 = sphi %s452_s6, %s630_s6  }
   0x6   : > { %s477_s12 = sadd.s32 1, %s433_s9   ;;  %s24_s13 = sadd.s32 1, %s429_s8 }
   0x7   : > { %s21_s14 = ssub.s32 %s433_s9, %s477_s12  ;;  %p31_p0 = scmp.ne.s32.totalorder %s429_s8, %s425_s7 }
   0x8   : > { %p22_p1 = scmp.eq.s32.totalorder %s21_s14, 0  ;;  %p32_p2 = scmp.eq.s32.totalorder %s433_s9, 0 }
   0x9   : > { %p37_p3 = scmp.ne.s32.totalorder %s425_s7, %s421_s6  ;;  %p38_p4 = scmp.eq.s32.totalorder %s473_s10, 0 }
   0xa   : > { %s489_s15 = scalar_select %p22_p1, %s429_s8, %s24_s13  }
   0xb   : > { %p491_p5 = por %p32_p2, %p31_p0  ;;  %p495_p6 = por %p38_p4, %p37_p3 }
   0xc   : > { %p61_p7 = scmp.eq.s32.totalorder %s473_s10, 1  ;;  %p67_p8 = scmp.eq.s32.totalorder %s263_s11, 1 }
   0xd   : > { %p298_p10 = scmp.lt.s32.totalorder %s433_s9, 2  ;;  %s87_s20 = sand.u32 1, %s429_s8  }
   0xe   : > { %p502_p11 = por %p61_p7, %p31_p0  ;;  %p506_p12 = por %p67_p8, %p37_p3 }
   0xf   : > { %s284_s21 = sshll.u32 %s433_s9, 9  ;;  %s266_s22 = sshll.u32 %s87_s20, 5 }
  0x10   : > { %s624_s18 = scalar_select %p502_p11, 1, 0 }
  0x11   : > { %s625_s19 = scalar_select %p506_p12, 1, 0 }
  0x12   : > { %s515_s25 = scalar_lea.hbm %s619_s0, %s284_s21  ;;  %s91_s26 = scalar_lea.vmem [#allocation2], %s266_s22 }
  0x13   : > { %s98_s27 = sshll.u32 %s91_s26, 4  ;;  %p519_p13 = pnand %p298_p10, %p491_p5  ;;  %s523_s27 = int_to_ptr.vmem [resolvable:$true] %s98_s27 }
  0x14   : > { %s525_s29 = scalar_lea.sflag [#allocation3], %s87_s20  ;;  %s337_s30 = scalar_lea.hbm %s515_s25, 512 }
  0x15   : > { %p338_p0 = scmp.ne.s32.totalorder %s515_s25, %s337_s30  ;;  %p339_p1 = pneg %p519_p13 }
  0x16   : > { %s342_s4 = scalar_lea.hbm %s619_s0, 1024  ;;  %p343_p4 = scmp.lt.u32.totalorder %s515_s25, %s619_s0 }
  0x17   : > { %p340_p2 = pnand %p339_p1, %p338_p0  ;;  %p344_p5 = scmp.lt.u32.totalorder %s342_s4, %s337_s30 }
  0x18   : > { %p346_p8 = scmp.lt.u32.totalorder %s337_s30, %s515_s25 }
  0x19   : > { %p341_p3 = pneg %p340_p2  ;;  %p345_p7 = por %p344_p5, %p343_p4 }
  0x1b   : > { %p347_p10 = por %p346_p8, %p345_p7 }
  0x1d   : > { %p348_p9 = pnand %p347_p10, %p341_p3 }
  0x1f   : > { %351 = shalt.err (!%p348_p9)
}
  0x20   : > { %s352_s13 = scalar_lea.vmem %s523_s27, 512  ;;  %s435_s14 = smov [#allocation2]  }
  0x21   : > { %p353_p0 = scmp.ne.s32.totalorder %s523_s27, %s352_s13  ;;  %s357_s16 = sshll.u32 %s435_s14, 4  ;;  %s358_s16 = int_to_ptr.vmem [resolvable:$false] %s357_s16 }
  0x22   : > { %s359_s20 = scalar_lea.vmem %s358_s16, 1024  ;;  %p360_p11 = scmp.lt.s32.totalorder %s523_s27, %s358_s16 }
  0x23   : > { %p355_p2 = pnand %p353_p0, %p339_p1  ;;  %p361_p4 = scmp.lt.s32.totalorder %s359_s20, %s352_s13 }
  0x25   : > { %p356_p12 = pneg %p355_p2  ;;  %p362_p5 = por %p361_p4, %p360_p11 }
  0x27   : > { %p363_p7 = pnand %p362_p5, %p356_p12 }
  0x29   : > { %366 = shalt.err (!%p363_p7)
}
  0x2a   : > { %s436_s21 = smov 64   ;;  %s437_s22 = smov 4  }
  0x2b   : > { %293 = dma.hbm_to_vmem [thread:$0]  (!%p519_p13), %s515_s25, 512, %s523_s27, %s525_s29, %s436_s21, %s436_s21, %s437_s22  }
  0x2c   : > { %p269_p9 = scmp.ge.s32.totalorder %s433_s9, 1  ;;  %p106_p1 = scmp.lt.s32.totalorder %s433_s9, 3 }
  0x2e   : > { %p107_p3 = pnand %p269_p9, %p106_p1 }
  0x2f   : > { %s556_s23 = sand.u32 (!%p107_p3), 1, %s425_s7  }
  0x30   : > { %110 = sbr.rel (%p107_p3) target bundleno = 192 (0xc0), region = 24  ;;  %s270_s24 = sshll.u32 (!%p107_p3), %s556_s23, 5 }
  0x31   : > { %s113_s26 = scalar_lea.sflag (!%p107_p3), [#allocation3], %s556_s23  ;;  %s116_s30 = scalar_lea.vmem (!%p107_p3), [#allocation2], %s270_s24 }
  0x37   : > { %412 = dma.done.wait (%p495_p6), %s113_s26, 512  }
  0x38   : > { %414 = vsyncadd (%p495_p6), %s113_s26, 4294966784  ;;  %s271_s25 = sshll.u32 %s556_s23, 4  ;;  %vm136_vm0 = vcmask 125952   ;;  %v277_v0 = vld [vmem:[%s116_s30 + $0x18] sm:$0xf]  ;;  %s438_s27 = smov 16  }
  0x39   : > { %v275_v1 = vld [vmem:[%s116_s30 + $0x10] sm:$0xf]  ;;  %v278_v2 = vld [vmem:[%s116_s30 + $0x1c] sm:$0xf]  ;;  %165 = vrot.lane.b32.xlu1 %v277_v0, %s438_s27  ;;  %v276_v3 = vld [vmem:[%s116_s30 + $0x14] sm:$0xf] }
  0x3a   : > { %150 = vrot.lane.b32.xlu0 %v275_v1, %s438_s27  ;;  %v273_v4 = vld [vmem:[%s116_s30 + $0x8] sm:$0xf]  ;;  %s134_s28 = scalar_lea.vmem [#allocation5], %s271_s25  ;;  %v135_v5 = vld [vmem:[%s116_s30] sm:$0xf]  ;;  %vm153_vm1 = vcmask 257152  }
  0x3b   : > { %143 = vst.msk [vmem:[%s134_s28 + $0x8] sm:$0xf] %vm136_vm0, %v273_v4  ;;  %v274_v6 = vld [vmem:[%s116_s30 + $0xc] sm:$0xf]  ;;  %v272_v7 = vld [vmem:[%s116_s30 + $0x4] sm:$0xf] }
  0x3c   : > { %137 = vst.msk [vmem:[%s134_s28] sm:$0xf] %vm136_vm0, %v135_v5  ;;  %146 = vst.msk [vmem:[%s134_s28 + $0xc] sm:$0xf] %vm136_vm0, %v274_v6  ;;  %s285_s17 = sshll.u32 %s473_s10, 8  ;;  %s190_s29 = sshll.u32 %s134_s28, 4  ;;  %s575_s29 = int_to_ptr.vmem [resolvable:$true] %s190_s29 }
  0x3d   : > { %140 = vst.msk [vmem:[%s134_s28 + $0x4] sm:$0xf] %vm136_vm0, %v272_v7  ;;  %172 = vrot.lane.b32.xlu1 %v278_v2, %s438_s27  ;;  %s573_s4 = scalar_lea.hbm %s620_s1, %s285_s17  ;;  %s177_s10 = scalar_lea.sflag [#allocation4], %s556_s23 }
  0x3e   : > { %158 = vrot.lane.b32.xlu0 %v276_v3, %s438_s27  ;;  %s367_s5 = scalar_lea.vmem %s575_s29, 256  ;;  %p627_p11 = scmp.ne.s32.totalorder %s624_s18, 0 }
  0x3f   : > { %p368_p6 = scmp.ne.s32.totalorder %s575_s29, %s367_s5  ;;  %s439_s11 = smov [#allocation5]  }
  0x40   : > { %s371_s13 = sshll.u32 %s439_s11, 4  ;;  %s372_s13 = int_to_ptr.vmem [resolvable:$false] %s371_s13 }
  0x41   : > { %p369_p12 = pnand %p368_p6, %p627_p11  ;;  %s373_s14 = scalar_lea.vmem %s372_s13, 512 }
  0x42   : > { %p374_p8 = scmp.lt.s32.totalorder %s575_s29, %s372_s13  ;;  %p375_p10 = scmp.lt.s32.totalorder %s373_s14, %s367_s5 }
  0x43   : > { %p370_p13 = pneg %p369_p12 }
  0x44   : > { %p376_p0 = por %p375_p10, %p374_p8 }
  0x46   : > { %p377_p2 = pnand %p376_p0, %p370_p13 }
  0xab   : > { %v166_v8 = vpop.permute.xlu1 %165 }
  0xac   : > { %v151_v9 = vpop.permute.xlu0 %150  ;;  %168 = vst.msk [vmem:[%s134_s28 + $0x8] sm:$0xf] %vm153_vm1, %v166_v8 }
  0xad   : > { %154 = vst.msk [vmem:[%s134_s28] sm:$0xf] %vm153_vm1, %v151_v9 }
  0xaf   : > { %v173_v10 = vpop.permute.xlu1 %172 }
  0xb0   : > { %v159_v11 = vpop.permute.xlu0 %158  ;;  %175 = vst.msk [vmem:[%s134_s28 + $0xc] sm:$0xf] %vm153_vm1, %v173_v10 }
  0xb1   : > { %161 = vst.msk [vmem:[%s134_s28 + $0x4] sm:$0xf] %vm153_vm1, %v159_v11 }
  0xb2   : > { %380 = shalt.err (!%p377_p2)
}
  0xb3   : > { %s381_s16 = scalar_lea.hbm %s573_s4, 256  ;;  %s385_s22 = scalar_lea.hbm %s620_s1, 512 }
  0xb4   : > { %p382_p4 = scmp.ne.s32.totalorder %s573_s4, %s381_s16  ;;  %p386_p9 = scmp.lt.u32.totalorder %s573_s4, %s620_s1 }
  0xb5   : > { %p387_p1 = scmp.lt.u32.totalorder %s385_s22, %s381_s16  ;;  %p389_p6 = scmp.lt.u32.totalorder %s381_s16, %s573_s4 }
  0xb6   : > { %p383_p5 = pnand %p382_p4, %p627_p11 }
  0xb7   : > { %p388_p3 = por %p387_p1, %p386_p9 }
  0xb8   : > { %p384_p7 = pneg %p383_p5 }
  0xb9   : > { %p390_p12 = por %p389_p6, %p388_p3 }
  0xbb   : > { %p391_p13 = pnand %p390_p12, %p384_p7 }
  0xbd   : > { %394 = shalt.err (!%p391_p13)
}
  0xbe   : > { %s440_s30 = smov 128   ;;  %s441_s25 = smov 8  }
  0xbf   : > { %288 = dma.vmem_to_hbm [thread:$0]  (%p627_p11), %s575_s29, 256, %s573_s4, %s177_s10, %s440_s30, %s440_s30, %s441_s25  }
  0xc0 PF: > { %s205_s27 = sand.u32 1, %s421_s6   ;;  %p628_p8 = scmp.ne.s32.totalorder %s625_s19, 0 }
  0xc1   : > { %p629_p10 = scmp.ge.s32.totalorder %s433_s9, 2  ;;  %s206_s28 = scalar_lea.sflag [#allocation4], %s205_s27 }
  0xc3   : > { %p295_p0 = pnand %p629_p10, %p628_p8 }
  0xc5   : > { %416 = dma.done.wait (!%p295_p0), %s206_s28, 256  }
  0xc6   : > { %418 = vsyncadd (!%p295_p0), %s206_s28, 4294967040  ;;  %p14_p2 = scmp.ge.s32.totalorder %s477_s12, 4   ;;  %s630_s6 = smov %s425_s7 }
  0xc7   : > { %s631_s7 = smov %s429_s8  ;;  %s632_s8 = smov %s489_s15 }
  0xc8   : > { %s633_s9 = smov %s477_s12  ;;  %16 = sbr.rel (!%p14_p2) target bundleno = 5 (0x5), region = 76 }
  0xcf   :  { %211 = vsyncpa [#allocation3], 1 }
  0xd0   :  { %213 = vsyncpa [#allocation3 + $0x1], 1 }
  0xd1   :  { %214 = vsyncpa [#allocation4], 1 }
  0xd2   :  { %216 = vsyncpa [#allocation4 + $0x1], 1 }

</bundles_post_ra>
